<compile_context>
chip_gen: v7x
topology: tpu7x:2x2x1
jax: 0.10.0
libtpu: 0.0.40
codegen_flags: <defaults>
</compile_context>

<pallas_src>
import functools

import jax
import jax.numpy as jnp
from jax import lax
from jax.experimental import pallas as pl
from jax.experimental.pallas import tpu as pltpu


# ----------------------------- configuration ------------------------------
B = 2            # batch
C_IN = 3         # image channels
IMG = 16         # spatial (H = W)
PATCH = 4        # patch size
N = (IMG // PATCH) ** 2          # 16 patches per image
P = C_IN * PATCH * PATCH         # 48 flattened patch dim
D = 32           # hidden size
HEADS = 2
HD = D // HEADS                  # 16 head dim
DM = 64          # MLP hidden
NUM_CLASSES = 10
LN_EPS = 1e-6
LANE = 128       # TPU lane width
QKV_W = HEADS * 3 * HD           # 96 fused QKV width


# ------------------------------ kernel utils -------------------------------
def _norm(v):
    """LayerNorm without affine (gamma/beta folded into adjacent matmuls)."""
    mu = jnp.mean(v, axis=-1, keepdims=True)
    var = jnp.mean((v - mu) ** 2, axis=-1, keepdims=True)
    return (v - mu) * lax.rsqrt(var + LN_EPS)


def _softmax(s):
    m = jnp.max(s, axis=-1, keepdims=True)
    e = jnp.exp(s - m)
    return e * pl.reciprocal(jnp.sum(e, axis=-1, keepdims=True), approx=True)


# ------------------------------- the kernel --------------------------------
def vit_classifier_kernel(
    x_ref,       # (rows, P)   f32   flattened patches for the whole batch
    wpatch_ref,  # (P, D)      bf16
    wqkv_ref,    # (D, 96)     bf16  fused [q*scale|k|v] per head, ln1 folded
    wo_ref,      # (HEADS, HD, D) bf16
    w1_ref,      # (D, DM)     bf16  ln2 gamma folded
    w2_ref,      # (DM, D)     bf16
    wc_ref,      # (D, 128)    bf16  lnf gamma folded, lane-padded classifier
    vec_ref,     # (VR, 128)   f32   packed per-channel vectors / mask / pool
    out_ref,     # (chunk, 128) f32  lane-dense logits slab
    *, chunk, off,
):
    rows = chunk * N
    bf16 = jnp.bfloat16

    def vrow(name, width):
        r = off[name]
        return vec_ref[r:r + 1, :width]                         # (1, width) f32

    # ---- patch embedding (Conv2d stride=patch as matmul) + pos (+bias) ----
    x = x_ref[...].astype(bf16)                                 # (rows, P)
    pos = vec_ref[off["pos"]:off["pos"] + rows, :D]             # (rows, D) f32
    h = jnp.dot(x, wpatch_ref[...],
                preferred_element_type=jnp.float32) + pos       # (rows, D) f32

    # ----------------- attention: one fused QKV, block-diag mask -----------
    hn = _norm(h).astype(bf16)
    qkv = jnp.dot(hn, wqkv_ref[...], preferred_element_type=jnp.float32)
    qkv = qkv + vec_ref[off["bqkv"]:off["bqkv"] + 1, :QKV_W]    # (rows, 96) f32
    amask = vec_ref[off["amask"]:off["amask"] + rows, :rows]    # (rows, rows) f32

    attn = None
    for hh in range(HEADS):                     # static unroll over heads
        base = hh * 3 * HD
        q = qkv[:, base:base + HD].astype(bf16)         # scale already folded
        k = qkv[:, base + HD:base + 2 * HD].astype(bf16)
        v = qkv[:, base + 2 * HD:base + 3 * HD].astype(bf16)
        # q @ k^T without explicit transpose: contract last dims.
        s = lax.dot_general(q, k, (((1,), (1,)), ((), ())),
                            preferred_element_type=jnp.float32)
        s = s + amask                            # block-diagonal (per-image)
        p = _softmax(s)
        ho = jnp.dot(p.astype(bf16), v, preferred_element_type=jnp.float32)
        contrib = jnp.dot(ho.astype(bf16), wo_ref[hh],
                          preferred_element_type=jnp.float32)
        attn = contrib if attn is None else attn + contrib
    h = h + attn + vrow("bo", D)

    # --------------------------------- MLP ---------------------------------
    hn = _norm(h).astype(bf16)
    m = jnp.dot(hn, w1_ref[...], preferred_element_type=jnp.float32) + vrow("b1", DM)
    # TODO(synk): HF ViT checkpoints use exact erf-GELU; tanh GELU kept here
    # (EUP-friendly) since weights are synthetic.
    m = jax.nn.gelu(m, approximate=True)
    m = jnp.dot(m.astype(bf16), w2_ref[...],
                preferred_element_type=jnp.float32) + vrow("b2", D)
    h = h + m

    # -------- head: norm -> per-row classifier -> MXU pool -> +bias --------
    hn = _norm(h).astype(bf16)
    # TODO(synk): real HF ViT classifies on the CLS token / pooler; synthetic
    # model uses mean pooling (done as a matmul with a block-diag 1/N matrix).
    scores = jnp.dot(hn, wc_ref[...],
                     preferred_element_type=jnp.float32)        # (rows, 128)
    pool = vec_ref[off["pool"]:off["pool"] + chunk, :rows].astype(bf16)
    pooled = jnp.dot(pool, scores.astype(bf16),
                     preferred_element_type=jnp.float32)        # (chunk, 128)
    out_ref[...] = pooled + vec_ref[off["bc"]:off["bc"] + 1, :]  # lane-dense


# ------------------------- parameter packing (once) ------------------------
def _pad_lanes(a):
    a = jnp.atleast_2d(jnp.asarray(a, jnp.float32))
    return jnp.pad(a, ((0, 0), (0, LANE - a.shape[1])))


def prepare_params(raw, chunk):
    """Pack raw params into a handful of kernel-friendly arrays. Run ONCE."""
    scale = 1.0 / (HD ** 0.5)
    rows = chunk * N

    ln1_g = raw["ln1_g"].reshape(D); ln1_b = raw["ln1_b"].reshape(D)
    ln2_g = raw["ln2_g"].reshape(D); ln2_b = raw["ln2_b"].reshape(D)
    lnf_g = raw["lnf_g"].reshape(D); lnf_b = raw["lnf_b"].reshape(D)

    # Fused QKV (D, 96): per-head [q*scale | k | v] columns.
    wcols, bparts = [], []
    bq = raw["bq"].reshape(D); bk = raw["bk"].reshape(D); bv = raw["bv"].reshape(D)
    for h in range(HEADS):
        sl = slice(h * HD, (h + 1) * HD)
        wcols += [raw["wq"][:, sl] * scale, raw["wk"][:, sl], raw["wv"][:, sl]]
        bparts += [bq[sl] * scale, bk[sl], bv[sl]]
    wqkv = jnp.concatenate(wcols, axis=1)                       # (D, 96)
    bqkv = jnp.concatenate(bparts).reshape(1, QKV_W)            # (1, 96)
    # Fold ln1 affine: (norm*g + b) @ W + c == norm @ (diag(g) W) + (b @ W + c)
    bqkv = bqkv + ln1_b.reshape(1, D) @ wqkv
    wqkv = wqkv * ln1_g.reshape(D, 1)

    wo = jnp.stack([raw["wo"][h * HD:(h + 1) * HD, :]
                    for h in range(HEADS)], axis=0)             # (HEADS, HD, D)

    # MLP: fold ln2 affine into w1 / b1.
    b1 = raw["b1"].reshape(1, DM) + ln2_b.reshape(1, D) @ raw["w1"]
    w1 = raw["w1"] * ln2_g.reshape(D, 1)
    w2 = raw["w2"]
    b2 = raw["b2"].reshape(1, D)

    # Classifier padded to 128 lanes, lnf affine folded in.
    wc = jnp.pad(raw["wc"], ((0, 0), (0, LANE - NUM_CLASSES)))  # (D, 128)
    bc = jnp.pad(raw["bc"].reshape(1, -1), ((0, 0), (0, LANE - NUM_CLASSES)))
    bc = bc + lnf_b.reshape(1, D) @ wc
    wc = wc * lnf_g.reshape(D, 1)

    # Block-diagonal mean-pool matrix and block-diagonal attention mask.
    pool = jnp.kron(jnp.eye(chunk, dtype=jnp.float32),
                    jnp.ones((1, N), jnp.float32)) / float(N)   # (chunk, rows)
    img_id = jnp.arange(rows) // N
    amask = jnp.where(img_id[:, None] == img_id[None, :],
                      0.0, -1e9).astype(jnp.float32)            # (rows, rows)

    # Patch bias folded into position embeddings, tiled per image in chunk.
    pos_eff = raw["pos"] + raw["b_patch"].reshape(1, D)
    pos_tiled = jnp.tile(pos_eff, (chunk, 1))                   # (rows, D)

    blocks, offsets = [], {}

    def push(name, arr2d):
        offsets[name] = sum(b.shape[0] for b in blocks)
        blocks.append(_pad_lanes(arr2d))

    push("pos", pos_tiled)
    push("bqkv", bqkv)
    push("bo", raw["bo"])
    push("b1", b1)
    push("b2", b2)
    push("bc", bc)
    push("pool", pool)
    push("amask", amask)

    vec = jnp.concatenate(blocks, axis=0)
    total = vec.shape[0]
    vr = ((total + 7) // 8) * 8
    vec = jnp.pad(vec, ((0, vr - total), (0, 0)))               # sublane-pad rows

    bf16 = jnp.bfloat16
    packed = {
        "w_patch": raw["w_patch"].astype(bf16),
        "wqkv": wqkv.astype(bf16),
        "wo": wo.astype(bf16),
        "w1": w1.astype(bf16),
        "w2": w2.astype(bf16),
        "wc": wc.astype(bf16),
        "vec": vec.astype(jnp.float32),
    }
    return packed, offsets


# ------------------------------- wrapper ------------------------------------
def make_forward(packed, offsets, chunk):
    rows = chunk * N
    kernel = functools.partial(vit_classifier_kernel, chunk=chunk, off=offsets)
    weights = [packed["w_patch"], packed["wqkv"], packed["wo"],
               packed["w1"], packed["w2"], packed["wc"], packed["vec"]]

    in_specs = [pl.BlockSpec((rows, P), lambda i: (0, 0))]
    in_specs += [
        pl.BlockSpec(packed["w_patch"].shape, lambda i: (0, 0)),
        pl.BlockSpec(packed["wqkv"].shape, lambda i: (0, 0)),
        pl.BlockSpec(packed["wo"].shape, lambda i: (0, 0, 0)),
        pl.BlockSpec(packed["w1"].shape, lambda i: (0, 0)),
        pl.BlockSpec(packed["w2"].shape, lambda i: (0, 0)),
        pl.BlockSpec(packed["wc"].shape, lambda i: (0, 0)),
        pl.BlockSpec(packed["vec"].shape, lambda i: (0, 0)),
    ]

    # Single grid step on all generations (v5e/v6e/v7x): the whole batch is one
    # fused invocation -> full-dim lane-dense (chunk, 128) output block, no
    # duplicated weight prologue DMA, no per-step overhead.
    call = pl.pallas_call(
        kernel,
        out_shape=jax.ShapeDtypeStruct((chunk, LANE), jnp.float32),
        grid=(1,),
        in_specs=in_specs,
        out_specs=pl.BlockSpec((chunk, LANE), lambda i: (0, 0)),
        compiler_params=pltpu.CompilerParams(
            dimension_semantics=("arbitrary",)),
    )

    @jax.jit
    def forward(pixel_values):
        b, c, hgt, wdt = pixel_values.shape
        nh, nw = hgt // PATCH, wdt // PATCH
        # NCHW -> (B*N, C*ph*pw), channel-major patch flattening (Conv2d order).
        patches = pixel_values.reshape(b, c, nh, PATCH, nw, PATCH)
        patches = patches.transpose(0, 2, 4, 1, 3, 5)
        patches = patches.reshape(b * nh * nw, c * PATCH * PATCH)
        out = call(patches, *weights)               # (B, 128) lane-dense
        return out[:, :NUM_CLASSES]

    return forward


# -------------------------- deterministic params ---------------------------
def init_params(key):
    ks = jax.random.split(key, 16)

    def dense(k, shape, scale=0.02):
        return (scale * jax.random.normal(k, shape)).astype(jnp.float32)

    return {
        "w_patch": dense(ks[0], (P, D)),
        "b_patch": jnp.zeros((1, D), jnp.float32),
        "pos":     dense(ks[1], (N, D)),
        "ln1_g":   jnp.ones((1, D), jnp.float32),
        "ln1_b":   jnp.zeros((1, D), jnp.float32),
        "wq": dense(ks[2], (D, D)), "bq": jnp.zeros((1, D), jnp.float32),
        "wk": dense(ks[3], (D, D)), "bk": jnp.zeros((1, D), jnp.float32),
        "wv": dense(ks[4], (D, D)), "bv": jnp.zeros((1, D), jnp.float32),
        "wo": dense(ks[5], (D, D)), "bo": jnp.zeros((1, D), jnp.float32),
        "ln2_g":   jnp.ones((1, D), jnp.float32),
        "ln2_b":   jnp.zeros((1, D), jnp.float32),
        "w1": dense(ks[6], (D, DM)),  "b1": jnp.zeros((1, DM), jnp.float32),
        "w2": dense(ks[7], (DM, D)),  "b2": jnp.zeros((1, D), jnp.float32),
        "lnf_g":   jnp.ones((1, D), jnp.float32),
        "lnf_b":   jnp.zeros((1, D), jnp.float32),
        "wc": dense(ks[8], (D, NUM_CLASSES)),
        "bc": jnp.zeros((1, NUM_CLASSES), jnp.float32),
    }


if __name__ == "__main__":
    key = jax.random.PRNGKey(0)
    k_img, k_par = jax.random.split(key)

    pixel_values = jax.random.normal(k_img, (B, C_IN, IMG, IMG), dtype=jnp.float32)
    raw_params = init_params(k_par)

    chunk = B                                    # whole batch in one grid step
    packed, offsets = prepare_params(raw_params, chunk)   # one-time packing
    forward = make_forward(packed, offsets, chunk)

    logits = forward(pixel_values)
    jax.block_until_ready(logits)

    assert logits.shape == (B, NUM_CLASSES), logits.shape
    assert jnp.all(jnp.isfinite(logits)), "non-finite logits"
    # TODO(synk): `from_pretrained` checkpoint loading / param freezing has no
    # kernel-side equivalent; weights are synthetic and freezing is a no-op at
    # inference.
    print("KERNEL_OK")
</pallas_src>

<mosaic_0001>
module attributes {stable_mosaic.version = 11 : i64} {
  func.func @vit_classifier_kernel(%arg0: i32, %arg1: memref<32x48xf32, #tpu.memory_space<vmem>>, %arg2: memref<48x32xbf16, #tpu.memory_space<vmem>>, %arg3: memref<32x96xbf16, #tpu.memory_space<vmem>>, %arg4: memref<2x16x32xbf16, #tpu.memory_space<vmem>>, %arg5: memref<32x64xbf16, #tpu.memory_space<vmem>>, %arg6: memref<64x32xbf16, #tpu.memory_space<vmem>>, %arg7: memref<32x128xbf16, #tpu.memory_space<vmem>>, %arg8: memref<72x128xf32, #tpu.memory_space<vmem>>, %arg9: memref<2x128xf32, #tpu.memory_space<vmem>>) attributes {dimension_semantics = [#tpu.dimension_semantics<arbitrary>], iteration_bounds = array<i64: 1>, scalar_prefetch = 0 : i64, scratch_operands = 0 : i64, tpu.core_type = #tpu.core_type<tc>, window_params = [{pipeline_mode = #tpu.pipeline_mode<synchronous>, transform_indices = @transform_0, window_bounds = array<i64: 32, 48>}, {pipeline_mode = #tpu.pipeline_mode<synchronous>, transform_indices = @transform_1, window_bounds = array<i64: 48, 32>}, {pipeline_mode = #tpu.pipeline_mode<synchronous>, transform_indices = @transform_2, window_bounds = array<i64: 32, 96>}, {pipeline_mode = #tpu.pipeline_mode<synchronous>, transform_indices = @transform_3, window_bounds = array<i64: 2, 16, 32>}, {pipeline_mode = #tpu.pipeline_mode<synchronous>, transform_indices = @transform_4, window_bounds = array<i64: 32, 64>}, {pipeline_mode = #tpu.pipeline_mode<synchronous>, transform_indices = @transform_5, window_bounds = array<i64: 64, 32>}, {pipeline_mode = #tpu.pipeline_mode<synchronous>, transform_indices = @transform_6, window_bounds = array<i64: 32, 128>}, {pipeline_mode = #tpu.pipeline_mode<synchronous>, transform_indices = @transform_7, window_bounds = array<i64: 72, 128>}, {pipeline_mode = #tpu.pipeline_mode<synchronous>, transform_indices = @transform_8, window_bounds = array<i64: 2, 128>}]} {
    %c0 = arith.constant 0 : index
    %c0_0 = arith.constant 0 : index
    %0 = vector.load %arg1[%c0, %c0_0] : memref<32x48xf32, #tpu.memory_space<vmem>>, vector<32x48xf32>
    %1 = arith.truncf %0 : vector<32x48xf32> to vector<32x48xbf16>
    %c0_1 = arith.constant 0 : index
    %c0_2 = arith.constant 0 : index
    %2 = vector.load %arg8[%c0_1, %c0_2] : memref<72x128xf32, #tpu.memory_space<vmem>>, vector<32x32xf32>
    %c0_3 = arith.constant 0 : index
    %c0_4 = arith.constant 0 : index
    %3 = vector.load %arg2[%c0_3, %c0_4] : memref<48x32xbf16, #tpu.memory_space<vmem>>, vector<48x32xbf16>
    %cst = arith.constant dense<0.000000e+00> : vector<32x32xf32>
    %4 = tpu.matmul %1, %3, %cst {dimension_numbers = #tpu.dot_dimension_numbers<[1], [0], [0], [1], [0, 0, 1, 1], [], []>} : vector<32x48xbf16>, vector<48x32xbf16>, vector<32x32xf32> -> vector<32x32xf32>
    %5 = arith.addf %4, %2 : vector<32x32xf32>
    %cst_5 = arith.constant dense<0.000000e+00> : vector<32xf32>
    %6 = vector.multi_reduction <add>, %5, %cst_5 [1] : vector<32x32xf32> to vector<32xf32>
    %7 = vector.shape_cast %6 : vector<32xf32> to vector<32x1xf32>
    %cst_6 = arith.constant 3.200000e+01 : f32
    %8 = vector.broadcast %cst_6 : f32 to vector<32x1xf32>
    %9 = arith.divf %7, %8 : vector<32x1xf32>
    %10 = vector.broadcast %9 : vector<32x1xf32> to vector<32x32xf32>
    %11 = arith.subf %5, %10 : vector<32x32xf32>
    %12 = arith.mulf %11, %11 : vector<32x32xf32>
    %cst_7 = arith.constant dense<0.000000e+00> : vector<32xf32>
    %13 = vector.multi_reduction <add>, %12, %cst_7 [1] : vector<32x32xf32> to vector<32xf32>
    %14 = vector.shape_cast %13 : vector<32xf32> to vector<32x1xf32>
    %cst_8 = arith.constant 3.200000e+01 : f32
    %15 = vector.broadcast %cst_8 : f32 to vector<32x1xf32>
    %16 = arith.divf %14, %15 : vector<32x1xf32>
    %17 = vector.broadcast %9 : vector<32x1xf32> to vector<32x32xf32>
    %18 = arith.subf %5, %17 : vector<32x32xf32>
    %cst_9 = arith.constant 9.99999997E-7 : f32
    %19 = vector.broadcast %cst_9 : f32 to vector<32x1xf32>
    %20 = arith.addf %16, %19 : vector<32x1xf32>
    %21 = math.rsqrt %20 : vector<32x1xf32>
    %22 = vector.broadcast %21 : vector<32x1xf32> to vector<32x32xf32>
    %23 = arith.mulf %18, %22 : vector<32x32xf32>
    %24 = arith.truncf %23 : vector<32x32xf32> to vector<32x32xbf16>
    %c0_10 = arith.constant 0 : index
    %c0_11 = arith.constant 0 : index
    %25 = vector.load %arg3[%c0_10, %c0_11] : memref<32x96xbf16, #tpu.memory_space<vmem>>, vector<32x96xbf16>
    %cst_12 = arith.constant dense<0.000000e+00> : vector<32x96xf32>
    %26 = tpu.matmul %24, %25, %cst_12 {dimension_numbers = #tpu.dot_dimension_numbers<[1], [0], [0], [1], [0, 0, 1, 1], [], []>} : vector<32x32xbf16>, vector<32x96xbf16>, vector<32x96xf32> -> vector<32x96xf32>
    %c32 = arith.constant 32 : index
    %c0_13 = arith.constant 0 : index
    %27 = vector.load %arg8[%c32, %c0_13] : memref<72x128xf32, #tpu.memory_space<vmem>>, vector<1x96xf32>
    %28 = vector.broadcast %27 : vector<1x96xf32> to vector<32x96xf32>
    %29 = arith.addf %26, %28 : vector<32x96xf32>
    %c39 = arith.constant 39 : index
    %c0_14 = arith.constant 0 : index
    %30 = vector.load %arg8[%c39, %c0_14] : memref<72x128xf32, #tpu.memory_space<vmem>>, vector<32x32xf32>
    %31 = vector.extract_strided_slice %29 {offsets = [0, 0], sizes = [32, 16], strides = [1, 1]} : vector<32x96xf32> to vector<32x16xf32>
    %32 = arith.truncf %31 : vector<32x16xf32> to vector<32x16xbf16>
    %33 = vector.extract_strided_slice %29 {offsets = [0, 16], sizes = [32, 16], strides = [1, 1]} : vector<32x96xf32> to vector<32x16xf32>
    %34 = arith.truncf %33 : vector<32x16xf32> to vector<32x16xbf16>
    %35 = vector.extract_strided_slice %29 {offsets = [0, 32], sizes = [32, 16], strides = [1, 1]} : vector<32x96xf32> to vector<32x16xf32>
    %36 = arith.truncf %35 : vector<32x16xf32> to vector<32x16xbf16>
    %cst_15 = arith.constant dense<0.000000e+00> : vector<32x32xf32>
    %37 = tpu.matmul %32, %34, %cst_15 {dimension_numbers = #tpu.dot_dimension_numbers<[1], [1], [0], [0], [0, 0, 1, 0], [], []>} : vector<32x16xbf16>, vector<32x16xbf16>, vector<32x32xf32> -> vector<32x32xf32>
    %38 = arith.addf %37, %30 : vector<32x32xf32>
    %cst_16 = arith.constant dense<0xFF800000> : vector<32xf32>
    %39 = vector.multi_reduction <maximumf>, %38, %cst_16 [1] : vector<32x32xf32> to vector<32xf32>
    %40 = vector.shape_cast %39 : vector<32xf32> to vector<32x1xf32>
    %41 = vector.broadcast %40 : vector<32x1xf32> to vector<32x32xf32>
    %42 = arith.subf %38, %41 : vector<32x32xf32>
    %43 = math.exp %42 : vector<32x32xf32>
    %cst_17 = arith.constant dense<0.000000e+00> : vector<32xf32>
    %44 = vector.multi_reduction <add>, %43, %cst_17 [1] : vector<32x32xf32> to vector<32xf32>
    %45 = vector.shape_cast %44 : vector<32xf32> to vector<32x1xf32>
    %46 = tpu.reciprocal %45 {approx = true} : vector<32x1xf32> -> vector<32x1xf32>
    %47 = vector.broadcast %46 : vector<32x1xf32> to vector<32x32xf32>
    %48 = arith.mulf %43, %47 : vector<32x32xf32>
    %49 = arith.truncf %48 : vector<32x32xf32> to vector<32x32xbf16>
    %cst_18 = arith.constant dense<0.000000e+00> : vector<32x16xf32>
    %50 = tpu.matmul %49, %36, %cst_18 {dimension_numbers = #tpu.dot_dimension_numbers<[1], [0], [0], [1], [0, 0, 1, 1], [], []>} : vector<32x32xbf16>, vector<32x16xbf16>, vector<32x16xf32> -> vector<32x16xf32>
    %51 = arith.truncf %50 : vector<32x16xf32> to vector<32x16xbf16>
    %c0_19 = arith.constant 0 : index
    %c0_20 = arith.constant 0 : index
    %c0_21 = arith.constant 0 : index
    %52 = vector.load %arg4[%c0_19, %c0_20, %c0_21] : memref<2x16x32xbf16, #tpu.memory_space<vmem>>, vector<1x16x32xbf16>
    %53 = vector.shape_cast %52 : vector<1x16x32xbf16> to vector<16x32xbf16>
    %cst_22 = arith.constant dense<0.000000e+00> : vector<32x32xf32>
    %54 = tpu.matmul %51, %53, %cst_22 {dimension_numbers = #tpu.dot_dimension_numbers<[1], [0], [0], [1], [0, 0, 1, 1], [], []>} : vector<32x16xbf16>, vector<16x32xbf16>, vector<32x32xf32> -> vector<32x32xf32>
    %55 = vector.extract_strided_slice %29 {offsets = [0, 48], sizes = [32, 16], strides = [1, 1]} : vector<32x96xf32> to vector<32x16xf32>
    %56 = arith.truncf %55 : vector<32x16xf32> to vector<32x16xbf16>
    %57 = vector.extract_strided_slice %29 {offsets = [0, 64], sizes = [32, 16], strides = [1, 1]} : vector<32x96xf32> to vector<32x16xf32>
    %58 = arith.truncf %57 : vector<32x16xf32> to vector<32x16xbf16>
    %59 = vector.extract_strided_slice %29 {offsets = [0, 80], sizes = [32, 16], strides = [1, 1]} : vector<32x96xf32> to vector<32x16xf32>
    %60 = arith.truncf %59 : vector<32x16xf32> to vector<32x16xbf16>
    %cst_23 = arith.constant dense<0.000000e+00> : vector<32x32xf32>
    %61 = tpu.matmul %56, %58, %cst_23 {dimension_numbers = #tpu.dot_dimension_numbers<[1], [1], [0], [0], [0, 0, 1, 0], [], []>} : vector<32x16xbf16>, vector<32x16xbf16>, vector<32x32xf32> -> vector<32x32xf32>
    %62 = arith.addf %61, %30 : vector<32x32xf32>
    %cst_24 = arith.constant dense<0xFF800000> : vector<32xf32>
    %63 = vector.multi_reduction <maximumf>, %62, %cst_24 [1] : vector<32x32xf32> to vector<32xf32>
    %64 = vector.shape_cast %63 : vector<32xf32> to vector<32x1xf32>
    %65 = vector.broadcast %64 : vector<32x1xf32> to vector<32x32xf32>
    %66 = arith.subf %62, %65 : vector<32x32xf32>
    %67 = math.exp %66 : vector<32x32xf32>
    %cst_25 = arith.constant dense<0.000000e+00> : vector<32xf32>
    %68 = vector.multi_reduction <add>, %67, %cst_25 [1] : vector<32x32xf32> to vector<32xf32>
    %69 = vector.shape_cast %68 : vector<32xf32> to vector<32x1xf32>
    %70 = tpu.reciprocal %69 {approx = true} : vector<32x1xf32> -> vector<32x1xf32>
    %71 = vector.broadcast %70 : vector<32x1xf32> to vector<32x32xf32>
    %72 = arith.mulf %67, %71 : vector<32x32xf32>
    %73 = arith.truncf %72 : vector<32x32xf32> to vector<32x32xbf16>
    %cst_26 = arith.constant dense<0.000000e+00> : vector<32x16xf32>
    %74 = tpu.matmul %73, %60, %cst_26 {dimension_numbers = #tpu.dot_dimension_numbers<[1], [0], [0], [1], [0, 0, 1, 1], [], []>} : vector<32x32xbf16>, vector<32x16xbf16>, vector<32x16xf32> -> vector<32x16xf32>
    %75 = arith.truncf %74 : vector<32x16xf32> to vector<32x16xbf16>
    %c1 = arith.constant 1 : index
    %c0_27 = arith.constant 0 : index
    %c0_28 = arith.constant 0 : index
    %76 = vector.load %arg4[%c1, %c0_27, %c0_28] : memref<2x16x32xbf16, #tpu.memory_space<vmem>>, vector<1x16x32xbf16>
    %77 = vector.shape_cast %76 : vector<1x16x32xbf16> to vector<16x32xbf16>
    %cst_29 = arith.constant dense<0.000000e+00> : vector<32x32xf32>
    %78 = tpu.matmul %75, %77, %cst_29 {dimension_numbers = #tpu.dot_dimension_numbers<[1], [0], [0], [1], [0, 0, 1, 1], [], []>} : vector<32x16xbf16>, vector<16x32xbf16>, vector<32x32xf32> -> vector<32x32xf32>
    %79 = arith.addf %54, %78 : vector<32x32xf32>
    %80 = arith.addf %5, %79 : vector<32x32xf32>
    %c33 = arith.constant 33 : index
    %c0_30 = arith.constant 0 : index
    %81 = vector.load %arg8[%c33, %c0_30] : memref<72x128xf32, #tpu.memory_space<vmem>>, vector<1x32xf32>
    %82 = vector.broadcast %81 : vector<1x32xf32> to vector<32x32xf32>
    %83 = arith.addf %80, %82 : vector<32x32xf32>
    %cst_31 = arith.constant dense<0.000000e+00> : vector<32xf32>
    %84 = vector.multi_reduction <add>, %83, %cst_31 [1] : vector<32x32xf32> to vector<32xf32>
    %85 = vector.shape_cast %84 : vector<32xf32> to vector<32x1xf32>
    %cst_32 = arith.constant 3.200000e+01 : f32
    %86 = vector.broadcast %cst_32 : f32 to vector<32x1xf32>
    %87 = arith.divf %85, %86 : vector<32x1xf32>
    %88 = vector.broadcast %87 : vector<32x1xf32> to vector<32x32xf32>
    %89 = arith.subf %83, %88 : vector<32x32xf32>
    %90 = arith.mulf %89, %89 : vector<32x32xf32>
    %cst_33 = arith.constant dense<0.000000e+00> : vector<32xf32>
    %91 = vector.multi_reduction <add>, %90, %cst_33 [1] : vector<32x32xf32> to vector<32xf32>
    %92 = vector.shape_cast %91 : vector<32xf32> to vector<32x1xf32>
    %cst_34 = arith.constant 3.200000e+01 : f32
    %93 = vector.broadcast %cst_34 : f32 to vector<32x1xf32>
    %94 = arith.divf %92, %93 : vector<32x1xf32>
    %95 = vector.broadcast %87 : vector<32x1xf32> to vector<32x32xf32>
    %96 = arith.subf %83, %95 : vector<32x32xf32>
    %cst_35 = arith.constant 9.99999997E-7 : f32
    %97 = vector.broadcast %cst_35 : f32 to vector<32x1xf32>
    %98 = arith.addf %94, %97 : vector<32x1xf32>
    %99 = math.rsqrt %98 : vector<32x1xf32>
    %100 = vector.broadcast %99 : vector<32x1xf32> to vector<32x32xf32>
    %101 = arith.mulf %96, %100 : vector<32x32xf32>
    %102 = arith.truncf %101 : vector<32x32xf32> to vector<32x32xbf16>
    %c0_36 = arith.constant 0 : index
    %c0_37 = arith.constant 0 : index
    %103 = vector.load %arg5[%c0_36, %c0_37] : memref<32x64xbf16, #tpu.memory_space<vmem>>, vector<32x64xbf16>
    %cst_38 = arith.constant dense<0.000000e+00> : vector<32x64xf32>
    %104 = tpu.matmul %102, %103, %cst_38 {dimension_numbers = #tpu.dot_dimension_numbers<[1], [0], [0], [1], [0, 0, 1, 1], [], []>} : vector<32x32xbf16>, vector<32x64xbf16>, vector<32x64xf32> -> vector<32x64xf32>
    %c34 = arith.constant 34 : index
    %c0_39 = arith.constant 0 : index
    %105 = vector.load %arg8[%c34, %c0_39] : memref<72x128xf32, #tpu.memory_space<vmem>>, vector<1x64xf32>
    %106 = vector.broadcast %105 : vector<1x64xf32> to vector<32x64xf32>
    %107 = arith.addf %104, %106 : vector<32x64xf32>
    %108 = arith.mulf %107, %107 : vector<32x64xf32>
    %109 = arith.mulf %107, %108 : vector<32x64xf32>
    %cst_40 = arith.constant 4.471500e-02 : f32
    %110 = vector.broadcast %cst_40 : f32 to vector<32x64xf32>
    %111 = arith.mulf %110, %109 : vector<32x64xf32>
    %112 = arith.addf %107, %111 : vector<32x64xf32>
    %cst_41 = arith.constant 0.797884583 : f32
    %113 = vector.broadcast %cst_41 : f32 to vector<32x64xf32>
    %114 = arith.mulf %113, %112 : vector<32x64xf32>
    %115 = math.tanh %114 : vector<32x64xf32>
    %cst_42 = arith.constant 1.000000e+00 : f32
    %116 = vector.broadcast %cst_42 : f32 to vector<32x64xf32>
    %117 = arith.addf %116, %115 : vector<32x64xf32>
    %cst_43 = arith.constant 5.000000e-01 : f32
    %118 = vector.broadcast %cst_43 : f32 to vector<32x64xf32>
    %119 = arith.mulf %118, %117 : vector<32x64xf32>
    %120 = arith.mulf %107, %119 : vector<32x64xf32>
    %121 = arith.truncf %120 : vector<32x64xf32> to vector<32x64xbf16>
    %c0_44 = arith.constant 0 : index
    %c0_45 = arith.constant 0 : index
    %122 = vector.load %arg6[%c0_44, %c0_45] : memref<64x32xbf16, #tpu.memory_space<vmem>>, vector<64x32xbf16>
    %cst_46 = arith.constant dense<0.000000e+00> : vector<32x32xf32>
    %123 = tpu.matmul %121, %122, %cst_46 {dimension_numbers = #tpu.dot_dimension_numbers<[1], [0], [0], [1], [0, 0, 1, 1], [], []>} : vector<32x64xbf16>, vector<64x32xbf16>, vector<32x32xf32> -> vector<32x32xf32>
    %c35 = arith.constant 35 : index
    %c0_47 = arith.constant 0 : index
    %124 = vector.load %arg8[%c35, %c0_47] : memref<72x128xf32, #tpu.memory_space<vmem>>, vector<1x32xf32>
    %125 = vector.broadcast %124 : vector<1x32xf32> to vector<32x32xf32>
    %126 = arith.addf %123, %125 : vector<32x32xf32>
    %127 = arith.addf %83, %126 : vector<32x32xf32>
    %cst_48 = arith.constant dense<0.000000e+00> : vector<32xf32>
    %128 = vector.multi_reduction <add>, %127, %cst_48 [1] : vector<32x32xf32> to vector<32xf32>
    %129 = vector.shape_cast %128 : vector<32xf32> to vector<32x1xf32>
    %cst_49 = arith.constant 3.200000e+01 : f32
    %130 = vector.broadcast %cst_49 : f32 to vector<32x1xf32>
    %131 = arith.divf %129, %130 : vector<32x1xf32>
    %132 = vector.broadcast %131 : vector<32x1xf32> to vector<32x32xf32>
    %133 = arith.subf %127, %132 : vector<32x32xf32>
    %134 = arith.mulf %133, %133 : vector<32x32xf32>
    %cst_50 = arith.constant dense<0.000000e+00> : vector<32xf32>
    %135 = vector.multi_reduction <add>, %134, %cst_50 [1] : vector<32x32xf32> to vector<32xf32>
    %136 = vector.shape_cast %135 : vector<32xf32> to vector<32x1xf32>
    %cst_51 = arith.constant 3.200000e+01 : f32
    %137 = vector.broadcast %cst_51 : f32 to vector<32x1xf32>
    %138 = arith.divf %136, %137 : vector<32x1xf32>
    %139 = vector.broadcast %131 : vector<32x1xf32> to vector<32x32xf32>
    %140 = arith.subf %127, %139 : vector<32x32xf32>
    %cst_52 = arith.constant 9.99999997E-7 : f32
    %141 = vector.broadcast %cst_52 : f32 to vector<32x1xf32>
    %142 = arith.addf %138, %141 : vector<32x1xf32>
    %143 = math.rsqrt %142 : vector<32x1xf32>
    %144 = vector.broadcast %143 : vector<32x1xf32> to vector<32x32xf32>
    %145 = arith.mulf %140, %144 : vector<32x32xf32>
    %146 = arith.truncf %145 : vector<32x32xf32> to vector<32x32xbf16>
    %c0_53 = arith.constant 0 : index
    %c0_54 = arith.constant 0 : index
    %147 = vector.load %arg7[%c0_53, %c0_54] : memref<32x128xbf16, #tpu.memory_space<vmem>>, vector<32x128xbf16>
    %cst_55 = arith.constant dense<0.000000e+00> : vector<32x128xf32>
    %148 = tpu.matmul %146, %147, %cst_55 {dimension_numbers = #tpu.dot_dimension_numbers<[1], [0], [0], [1], [0, 0, 1, 1], [], []>} : vector<32x32xbf16>, vector<32x128xbf16>, vector<32x128xf32> -> vector<32x128xf32>
    %c37 = arith.constant 37 : index
    %c0_56 = arith.constant 0 : index
    %149 = vector.load %arg8[%c37, %c0_56] : memref<72x128xf32, #tpu.memory_space<vmem>>, vector<2x32xf32>
    %150 = arith.truncf %149 : vector<2x32xf32> to vector<2x32xbf16>
    %151 = arith.truncf %148 : vector<32x128xf32> to vector<32x128xbf16>
    %cst_57 = arith.constant dense<0.000000e+00> : vector<2x128xf32>
    %152 = tpu.matmul %150, %151, %cst_57 {dimension_numbers = #tpu.dot_dimension_numbers<[1], [0], [0], [1], [0, 0, 1, 1], [], []>} : vector<2x32xbf16>, vector<32x128xbf16>, vector<2x128xf32> -> vector<2x128xf32>
    %c36 = arith.constant 36 : index
    %c0_58 = arith.constant 0 : index
    %153 = vector.load %arg8[%c36, %c0_58] : memref<72x128xf32, #tpu.memory_space<vmem>>, vector<1x128xf32>
    %154 = vector.broadcast %153 : vector<1x128xf32> to vector<2x128xf32>
    %155 = arith.addf %152, %154 : vector<2x128xf32>
    %c0_59 = arith.constant 0 : index
    %c0_60 = arith.constant 0 : index
    %156 = vector.load %arg9[%c0_59, %c0_60] : memref<2x128xf32, #tpu.memory_space<vmem>>, vector<2x128xf32>
    tpu.vector_store %arg9[%c0_59, %c0_60], %155 {strides = array<i32>} : memref<2x128xf32, #tpu.memory_space<vmem>>, vector<2x128xf32>,
    return
  }
  func.func @transform_0(%arg0: i32) -> (i32, i32) {
    %c0_i32 = arith.constant 0 : i32
    %c0_i32_0 = arith.constant 0 : i32
    %c0_i32_1 = arith.constant 0 : i32
    return %c0_i32, %c0_i32_0 : i32, i32
  }
  func.func @transform_1(%arg0: i32) -> (i32, i32) {
    %c0_i32 = arith.constant 0 : i32
    %c0_i32_0 = arith.constant 0 : i32
    %c0_i32_1 = arith.constant 0 : i32
    return %c0_i32, %c0_i32_0 : i32, i32
  }
  func.func @transform_2(%arg0: i32) -> (i32, i32) {
    %c0_i32 = arith.constant 0 : i32
    %c0_i32_0 = arith.constant 0 : i32
    %c0_i32_1 = arith.constant 0 : i32
    return %c0_i32, %c0_i32_0 : i32, i32
  }
  func.func @transform_3(%arg0: i32) -> (i32, i32, i32) {
    %c0_i32 = arith.constant 0 : i32
    %c0_i32_0 = arith.constant 0 : i32
    %c0_i32_1 = arith.constant 0 : i32
    %c0_i32_2 = arith.constant 0 : i32
    return %c0_i32, %c0_i32_0, %c0_i32_1 : i32, i32, i32
  }
  func.func @transform_4(%arg0: i32) -> (i32, i32) {
    %c0_i32 = arith.constant 0 : i32
    %c0_i32_0 = arith.constant 0 : i32
    %c0_i32_1 = arith.constant 0 : i32
    return %c0_i32, %c0_i32_0 : i32, i32
  }
  func.func @transform_5(%arg0: i32) -> (i32, i32) {
    %c0_i32 = arith.constant 0 : i32
    %c0_i32_0 = arith.constant 0 : i32
    %c0_i32_1 = arith.constant 0 : i32
    return %c0_i32, %c0_i32_0 : i32, i32
  }
  func.func @transform_6(%arg0: i32) -> (i32, i32) {
    %c0_i32 = arith.constant 0 : i32
    %c0_i32_0 = arith.constant 0 : i32
    %c0_i32_1 = arith.constant 0 : i32
    return %c0_i32, %c0_i32_0 : i32, i32
  }
  func.func @transform_7(%arg0: i32) -> (i32, i32) {
    %c0_i32 = arith.constant 0 : i32
    %c0_i32_0 = arith.constant 0 : i32
    %c0_i32_1 = arith.constant 0 : i32
    return %c0_i32, %c0_i32_0 : i32, i32
  }
  func.func @transform_8(%arg0: i32) -> (i32, i32) {
    %c0_i32 = arith.constant 0 : i32
    %c0_i32_0 = arith.constant 0 : i32
    %c0_i32_1 = arith.constant 0 : i32
    return %c0_i32, %c0_i32_0 : i32, i32
  }
}

</mosaic_0001>

<bundles_post_ra>
// kernel: forward.1
= control target key start
LH: loop header
LB: loop body
LE: loop exit
PB: predicated region body
PF: predicated region fallthrough
CT: control target
= control target key end

     0   :  { %vm65_vm0 = vcmask 392192   ;;  %s1844_s0 = inlined_call_operand.vmem [shape: f32[32,48], index: 0, kind: input, shape index: {}]   ;;  %s1845_s1 = inlined_call_operand.vmem [shape: bf16[48,32], index: 1, kind: input, shape index: {}]   ;;  %s1846_s2 = inlined_call_operand.vmem [shape: bf16[32,96], index: 2, kind: input, shape index: {}]   ;;  %s1847_s3 = inlined_call_operand.vmem [shape: bf16[2,16,32], index: 3, kind: input, shape index: {}]   ;;  %s1848_s4 = inlined_call_operand.vmem [shape: bf16[32,64], index: 4, kind: input, shape index: {}]   ;;  %s1849_s5 = inlined_call_operand.vmem [shape: bf16[64,32], index: 5, kind: input, shape index: {}]   ;;  %s1850_s6 = inlined_call_operand.vmem [shape: bf16[32,128], index: 6, kind: input, shape index: {}]   ;;  %s1851_s7 = inlined_call_operand.vmem [shape: f32[72,128], index: 7, kind: input, shape index: {}]   ;;  %s1852_s8 = inlined_call_operand.hbm [shape: f32[2,128], index: 8, kind: output, shape index: {}]  }
   0x1   :  { %v1418_v0 = vld [vmem:[%s1845_s1] sm:$0xff]   ;;  %v1419_v1 = vld [vmem:[%s1845_s1 + $0x8] sm:$0xff]   ;;  %v1420_v4 = vld [vmem:[%s1845_s1 + $0x10] sm:$0xff]  }
   0x2   :  { %1304 = vmatprep.subr.bf16.mxu0 %v1418_v0  ;;  %v31_v2 = vld [vmem:[%s1844_s0] sm:$0xff]  ;;  %v32_v3 = vld [vmem:[%s1844_s0 + $0x8] sm:$0xff]  ;;  %v33_v6 = vld [vmem:[%s1844_s0 + $0x10] sm:$0xff] }
   0x3   :  { %1305 = vmatpush3.bf16.msra.mxu0 %v1418_v0  ;;  %v35_v5 = vpack.c.bf16 %v32_v3, %v31_v2  ;;  %v34_v7 = vld [vmem:[%s1844_s0 + $0x18] sm:$0xff] }
   0x4   :  { %1306 = vmatprep.subr.bf16.mxu0 %v1419_v1  ;;  %v36_v8 = vpack.c.bf16 %v34_v7, %v33_v6 }
   0x5   :  { %1310 = vmatprep.mubr.msk.bf16.mxu0 %vm65_vm0, %v35_v5 }
   0x7   :  { %1307 = vmatpush3.bf16.msra.mxu0 %v1419_v1 }
   0x8   :  { %1308 = vmatprep.subr.bf16.mxu0 %v1420_v4 }
   0xb   :  { %1309 = vmatpush3.bf16.msra.mxu0 %v1420_v4 }
   0xc   :  { %13 = vsyncpa [#allocation3], 0  ;;  %v39_v9 = vld [vmem:[%s1851_s7 + $0x10] sm:$0xff]  ;;  %v37_v10 = vld [vmem:[%s1851_s7] sm:$0xff]  ;;  %vm121_vm1 = vcmask 261120   ;;  %vm265_vm2 = vcmask 130048  }
   0xd   :  { %v40_v12 = vld [vmem:[%s1851_s7 + $0x18] sm:$0xff]  ;;  %v38_v15 = vld [vmem:[%s1851_s7 + $0x8] sm:$0xff]  ;;  %v1421_v45 = vld [vmem:[%s1846_s2] sm:$0xff]   ;;  %s1521_s30 = smov 112   ;;  %s1522_s17 = smov 96   ;;  %vm959_vm3 = vcmask 523264  }
   0xe   :  { %1311 = vmatmul.mubr.msk.bf16.vlgmr.msra.gmra.mrb[0].mxu0 %vm65_vm0, %v36_v8  ;;  %v1422_v46 = vld [vmem:[%s1846_s2 + $0x8] sm:$0xff]   ;;  %1314 = vmatprep.subr.bf16.mxu1 %v1421_v45  ;;  %v1216_v6 = vld [vmem:[%s1851_s7 + $0x20] ss:$0 sm:$0xff]  ;;  %s1523_s18 = smov 64   ;;  %s1524_s19 = smov 80   ;;  %vm1527_vm4 = vmmov 0  }
   0xf   :  { %1315 = vmatpush3.bf16.msra.mxu1 %v1421_v45  ;;  %s1525_s20 = smov 48   ;;  %s1528_s21 = smov [#allocation2]  }
  0x10   :  { %1316 = vmatprep.subr.bf16.mxu1 %v1422_v46  ;;  %s1203_s22 = sshll.u32 %s1528_s21, 4  ;;  %s1204_s22 = int_to_ptr.vmem [resolvable:$true] %s1203_s22 }
  0x11   :  { %s1497_s23 = scalar_lea.vmem %s1204_s22, 32  ;;  %p1502_p1 = scmp.lt.s32.totalorder %s1204_s22, %s1204_s22 }
  0x12   :  { %p1498_p0 = scmp.ne.s32.totalorder %s1204_s22, %s1497_s23  ;;  %p1503_p2 = scmp.lt.s32.totalorder %s1497_s23, %s1497_s23 }
  0x13   :  { %1317 = vmatpush3.bf16.msra.mxu1 %v1422_v46 }
  0x14   :  { %p1504_p3 = por %p1503_p2, %p1502_p1 }
  0x16   :  { %p1505_p4 = pnand %p1504_p3, %p1498_p0 }
  0xe1   :  { %v1312_v11 = vpop.f32.mrb[0].mxu0 }
  0xe2   :  { %v1604_v13 = vadd.f32 %v1312_v11, %v39_v9  ;;  %v106_v14 = vpop.f32.mrb[1].mxu0 }
  0xe3   :  { %v1609_v16 = vadd.f32 %v106_v14, %v37_v10  ;;  %v1313_v17 = vpop.f32.mrb[2].mxu0 }
  0xe4   :  { %v1611_v18 = vadd.f32 %v1313_v17, %v40_v12  ;;  %v109_v19 = vpop.f32.mrb[3].mxu0  ;;  %v128_v20 = vsel %vm121_vm1, %v1604_v13, 0.0 }
  0xe5   :  { %v1615_v21 = vadd.f32 %v109_v19, %v38_v15  ;;  %129 = vadd.xlane.f32.xlu1 %v128_v20  ;;  %v122_v22 = vsel %vm121_vm1, %v1609_v16, 0.0 }
  0xe6   :  { %123 = vadd.xlane.f32.xlu0 %v122_v22  ;;  %v131_v23 = vsel %vm121_vm1, %v1611_v18, 0.0 }
  0xe7   :  { %v125_v24 = vsel %vm121_vm1, %v1615_v21, 0.0 }
  0xe9   :  { %132 = vadd.xlane.f32.xlu1 %v131_v23 }
  0xea   :  { %126 = vadd.xlane.f32.xlu0 %v125_v24  ;;  %v1659_v24 = vld [vmem:[%s1851_s7 + $0x27] sm:$0xff] }
 0x172   :  { %v130_v25 = vpop.xlane.xlu1 %129 }
 0x173   :  { %v137_v26 = vmul.f32 0.03125, %v130_v25  ;;  %v124_v27 = vpop.xlane.xlu0 %123 }
 0x174   :  { %v135_v28 = vmul.f32 0.03125, %v124_v27  ;;  %v1664_v27 = vld [vmem:[%s1851_s7 + $0x3f] sm:$0xff] }
 0x175   :  { %v141_v29 = vsub.f32 %v1604_v13, %v137_v26 }
 0x176   :  { %v139_v30 = vsub.f32 %v1609_v16, %v135_v28  ;;  %v133_v31 = vpop.xlane.xlu1 %132  ;;  %v1669_v28 = vld [vmem:[%s1851_s7 + $0x2f] sm:$0xff] }
 0x177   :  { %v138_v32 = vmul.f32 0.03125, %v133_v31  ;;  %v127_v33 = vpop.xlane.xlu0 %126  ;;  %v145_v39 = vmul.f32 %v141_v29, %v141_v29  ;;  %v1675_v31 = vld [vmem:[%s1851_s7 + $0x37] sm:$0xff] }
 0x178   :  { %v136_v34 = vmul.f32 0.03125, %v127_v33  ;;  %v143_v35 = vmul.f32 %v139_v30, %v139_v30 }
 0x179   :  { %v142_v36 = vsub.f32 %v1611_v18, %v138_v32  ;;  %v153_v41 = vsel %vm121_vm1, %v145_v39, 0.0 }
 0x17a   :  { %v140_v37 = vsub.f32 %v1615_v21, %v136_v34  ;;  %v147_v38 = vsel %vm121_vm1, %v143_v35, 0.0 }
 0x17b   :  { %148 = vadd.xlane.f32.xlu0 %v147_v38  ;;  %v146_v43 = vmul.f32 %v142_v36, %v142_v36 }
 0x17c   :  { %v144_v40 = vmul.f32 %v140_v37, %v140_v37 }
 0x17d   :  { %v156_v44 = vsel %vm121_vm1, %v146_v43, 0.0 }
 0x17e   :  { %v150_v42 = vsel %vm121_vm1, %v144_v40, 0.0 }
 0x17f   :  { %154 = vadd.xlane.f32.xlu0 %v153_v41  ;;  %151 = vadd.xlane.f32.xlu1 %v150_v42 }
 0x183   :  { %157 = vadd.xlane.f32.xlu1 %v156_v44 }
 0x208   :  { %v149_v47 = vpop.xlane.xlu0 %148 }
 0x209   :  { %v159_v48 = vmul.f32 0.03125, %v149_v47 }
 0x20b   :  { %v163_v49 = vadd.f32 1e-06, %v159_v48 }
 0x20c   :  { %v152_v50 = vpop.xlane.xlu1 %151  ;;  %v155_v51 = vpop.xlane.xlu0 %154 }
 0x20d   :  { %v160_v52 = vmul.f32 0.03125, %v152_v50  ;;  %v161_v53 = vmul.f32 0.03125, %v155_v51  ;;  %1433 = vrsqrt.f32 %v163_v49 }
 0x20f   :  { %v164_v54 = vadd.f32 1e-06, %v160_v52  ;;  %v165_v55 = vadd.f32 1e-06, %v161_v53 }
 0x210   :  { %v158_v56 = vpop.xlane.xlu1 %157 }
 0x211   :  { %1435 = vrsqrt.f32 %v164_v54  ;;  %v162_v57 = vmul.f32 0.03125, %v158_v56 }
 0x212   :  { %1437 = vrsqrt.f32 %v165_v55 }
 0x213   :  { %v166_v58 = vadd.f32 1e-06, %v162_v57 }
 0x215   :  { %1439 = vrsqrt.f32 %v166_v58 }
 0x217   :  { %v1434_v59 = vpop.eup %1433 }
 0x218   :  { %v171_v61 = vmul.f32 %v1434_v59, %v139_v30 }
 0x21b   :  { %v1436_v60 = vpop.eup %1435 }
 0x21c   :  { %v172_v62 = vmul.f32 %v1436_v60, %v140_v37  ;;  %v1438_v63 = vpop.eup %1437 }
 0x21d   :  { %v173_v2 = vmul.f32 %v1438_v63, %v141_v29 }
 0x21e   :  { %v175_v0 = vpack.c.bf16 %v172_v62, %v171_v61 }
 0x21f   :  { %v1440_v1 = vpop.eup %1439 }
 0x220   :  { %1318 = vmatprep.mubr.msk.bf16.mxu1 %vm121_vm1, %v175_v0  ;;  %v174_v3 = vmul.f32 %v1440_v1, %v142_v36 }
 0x222   :  { %v176_v4 = vpack.c.bf16 %v174_v3, %v173_v2 }
 0x224   :  { %1319 = vmatmul.mubr.msk.bf16.vlgmr.msra.gmra.mrb[0].mxu1 %vm121_vm1, %v176_v4 }
 0x2f7   :  { %v1320_v5 = vpop.f32.mrb[0].mxu1 }
 0x2f8   :  { %v238_v7 = vpop.f32.mrb[1].mxu1  ;;  %v247_v9 = vadd.f32 %v1320_v5, %v1216_v6 }
 0x2f9   :  { %v1321_v8 = vpop.f32.mrb[2].mxu1  ;;  %v239_v12 = vadd.f32 %v1216_v6, %v238_v7 }
 0x2fa   :  { %v250_v10 = vadd.f32 %v1321_v8, %v1216_v6  ;;  %v241_v11 = vpop.f32.mrb[3].mxu1 }
 0x2fb   :  { %v242_v14 = vadd.f32 %v1216_v6, %v241_v11 }
 0x2fc   :  { %v1642_v15 = vpack.c.bf16 %v250_v10, %v247_v9 }
 0x2fd   :  { %v1644_v17 = vpack.c.bf16 %v242_v14, %v239_v12 }
 0x2fe   :  { %263 = vrot.lane.b32.xlu1 %v1642_v15, %s1521_s30 }
 0x2ff   :  { %261 = vrot.lane.b32.xlu0 %v1644_v17, %s1521_s30  ;;  %1326 = vmatprep.mubr.msk.bf16.mxu1 %vm265_vm2, %v1644_v17 }
 0x370   :  { %v264_v22 = vpop.permute.xlu1 %263 }
 0x371   :  { %v262_v19 = vpop.permute.xlu0 %261  ;;  %v276_v23 = vsel %vm265_vm2, %v264_v22, 0 }
 0x372   :  { %v273_v20 = vsel %vm265_vm2, %v262_v19, 0  ;;  %1406 = vmatprep.subr.msk.bf16.mxu1 %vm265_vm2, %v262_v19 }
 0x373   :  { %1323 = vmatpush3.bf16.xpose.msra.mxu1 %v273_v20 }
 0x374   :  { %1407 = vmatprep.subr.msk.bf16.mxu1 %vm265_vm2, %v264_v22 }
 0x37b   :  { %1325 = vmatpush3.bf16.xpose.msra.mxu1 %v276_v23 }
 0x382   :  { %1327 = vmatmul.mubr.msk.bf16.vlgmr.msra.gmra.mrb[4].mxu1 %vm265_vm2, %v1642_v15 }
 0x455   :  { %v1328_v25 = vpop.f32.mrb[4].mxu1 }
 0x456   :  { %v312_v26 = vpop.f32.mrb[5].mxu1  ;;  %v321_v36 = vadd.f32 %v1328_v25, %v1675_v31 }
 0x457   :  { %v313_v29 = vadd.f32 %v312_v26, %v1659_v24  ;;  %v1329_v30 = vpop.f32.mrb[6].mxu1 }
 0x458   :  { %v315_v32 = vpop.f32.mrb[7].mxu1  ;;  %v324_v33 = vadd.f32 %v1329_v30, %v1664_v27  ;;  %v333_v39 = vsel %vm121_vm1, %v321_v36, -inf }
 0x459   :  { %v316_v34 = vadd.f32 %v315_v32, %v1669_v28  ;;  %v327_v35 = vsel %vm121_vm1, %v313_v29, -inf }
 0x45a   :  { %328 = vmax.xlane.f32.xlu1 %v327_v35  ;;  %v336_v38 = vsel %vm121_vm1, %v324_v33, -inf }
 0x45b   :  { %v330_v37 = vsel %vm121_vm1, %v316_v34, -inf }
 0x45c   :  { %331 = vmax.xlane.f32.xlu0 %v330_v37 }
 0x45e   :  { %337 = vmax.xlane.f32.xlu1 %v336_v38 }
 0x460   :  { %334 = vmax.xlane.f32.xlu0 %v333_v39 }
 0x46f   :  { %375 = vrot.lane.b32.xlu1 %v1642_v15, %s1522_s17 }
 0x4e7   :  { %v329_v40 = vpop.xlane.xlu1 %328 }
 0x4e8   :  { %v339_v44 = vsub.f32 %v313_v29, %v329_v40 }
 0x4e9   :  { %v332_v41 = vpop.xlane.xlu0 %331 }
 0x4ea   :  { %v340_v42 = vsub.f32 %v316_v34, %v332_v41  ;;  %v343_v50 = vmul.f32 1.442695, %v339_v44 }
 0x4eb   :  { %v338_v43 = vpop.xlane.xlu1 %337 }
 0x4ec   :  { %v342_v45 = vsub.f32 %v324_v33, %v338_v43  ;;  %v345_v46 = vmul.f32 1.442695, %v340_v42 }
 0x4ed   :  { %v335_v47 = vpop.xlane.xlu0 %334 }
 0x4ee   :  { %v349_v48 = vmul.f32 1.442695, %v342_v45  ;;  %v341_v49 = vsub.f32 %v321_v36, %v335_v47 }
 0x4ef   :  { %v376_v60 = vpop.permute.xlu1 %375 }
 0x4f0   :  { %1441 = vpow2.f32 %v349_v48  ;;  %v347_v51 = vmul.f32 1.442695, %v341_v49 }
 0x4f1   :  { %1443 = vpow2.f32 %v345_v46 }
 0x4f2   :  { %1445 = vpow2.f32 %v347_v51 }
 0x4f3   :  { %1447 = vpow2.f32 %v343_v50 }
 0x4fa   :  { %v1442_v52 = vpop.eup %1441 }
 0x4fb   :  { %v1444_v53 = vpop.eup %1443  ;;  %v360_v54 = vsel %vm121_vm1, %v1442_v52, 0.0 }
 0x4fc   :  { %v1446_v55 = vpop.eup %1445  ;;  %361 = vadd.xlane.f32.xlu1 %v360_v54  ;;  %v354_v58 = vsel %vm121_vm1, %v1444_v53, 0.0 }
 0x4fd   :  { %v357_v56 = vsel %vm121_vm1, %v1446_v55, 0.0  ;;  %v1448_v57 = vpop.eup %1447 }
 0x4fe   :  { %358 = vadd.xlane.f32.xlu0 %v357_v56  ;;  %v351_v59 = vsel %vm121_vm1, %v1448_v57, 0.0 }
 0x500   :  { %355 = vadd.xlane.f32.xlu1 %v354_v58 }
 0x502   :  { %352 = vadd.xlane.f32.xlu0 %v351_v59 }
 0x511   :  { %442 = vrot.lane.b32.xlu1 %v1644_v17, %s1523_s18 }
 0x515   :  { %444 = vrot.lane.b32.xlu1 %v1642_v15, %s1523_s18 }
 0x518   :  { %373 = vrot.lane.b32.xlu0 %v1644_v17, %s1522_s17 }
 0x519   :  { %440 = vrot.lane.b32.xlu1 %v1642_v15, %s1524_s19 }
 0x51c   :  { %438 = vrot.lane.b32.xlu0 %v1644_v17, %s1524_s19 }
 0x589   :  { %v362_v61 = vpop.xlane.xlu1 %361 }
 0x58b   :  { %v359_v62 = vpop.xlane.xlu0 %358 }
 0x58c   :  { %1449 = vrcp.f32 %v359_v62 }
 0x58d   :  { %v356_v63 = vpop.xlane.xlu1 %355 }
 0x58e   :  { %1451 = vrcp.f32 %v356_v63 }
 0x58f   :  { %1453 = vrcp.f32 %v362_v61  ;;  %v353_v0 = vpop.xlane.xlu0 %352 }
 0x590   :  { %1455 = vrcp.f32 %v353_v0 }
 0x591   :  { %v443_v5 = vpop.permute.xlu1 %442 }
 0x592   :  { %v453_v19 = vsel %vm265_vm2, %v443_v5, 0 }
 0x593   :  { %v374_v1 = vpop.permute.xlu0 %373 }
 0x594   :  { %1330 = vmatprep.subr.bf16.mxu0 %v374_v1 }
 0x595   :  { %1331 = vmatpush3.bf16.msra.mxu0 %v374_v1  ;;  %v445_v20 = vpop.permute.xlu1 %444 }
 0x596   :  { %1332 = vmatprep.subr.bf16.mxu0 %v376_v60  ;;  %v1450_v2 = vpop.eup %1449  ;;  %v456_v22 = vsel %vm265_vm2, %v445_v20, 0 }
 0x597   :  { %v369_v7 = vmul.f32 %v1450_v2, %v1446_v55  ;;  %v439_v14 = vpop.permute.xlu0 %438 }
 0x598   :  { %v1452_v3 = vpop.eup %1451 }
 0x599   :  { %v1454_v4 = vpop.eup %1453  ;;  %1333 = vmatpush3.bf16.msra.mxu0 %v376_v60  ;;  %v368_v9 = vmul.f32 %v1452_v3, %v1444_v53  ;;  %v441_v23 = vpop.permute.xlu1 %440  ;;  %v1423_v3 = vld [vmem:[%s1847_s3 + $0x8] sm:$0xff]  }
 0x59a   :  { %v1456_v6 = vpop.eup %1455  ;;  %1408 = vmatprep.subr.msk.bf16.mxu0 %vm265_vm2, %v443_v5  ;;  %v370_v10 = vmul.f32 %v1454_v4, %v1442_v52 }
 0x59b   :  { %v367_v8 = vmul.f32 %v1456_v6, %v1448_v57 }
 0x59c   :  { %v372_v12 = vpack.c.bf16 %v370_v10, %v369_v7 }
 0x59d   :  { %v371_v11 = vpack.c.bf16 %v368_v9, %v367_v8 }
 0x59f   :  { %1334 = vmatprep.mubr.msk.bf16.mxu0 %vm121_vm1, %v371_v11 }
 0x5a0   :  { %1335 = vmatmul.mubr.msk.bf16.vlgmr.msra.gmra.mrb[4].mxu0 %vm121_vm1, %v372_v12 }
 0x5a1   :  { %1342 = vmatprep.mubr.msk.bf16.mxu0 %vm265_vm2, %v439_v14  ;;  %v1424_v14 = vld [vmem:[%s1847_s3] sm:$0xff]  }
 0x5a2   :  { %1339 = vmatpush3.bf16.xpose.msra.mxu0 %v453_v19 }
 0x5a3   :  { %1409 = vmatprep.subr.msk.bf16.mxu0 %vm265_vm2, %v445_v20 }
 0x5aa   :  { %1341 = vmatpush3.bf16.xpose.msra.mxu0 %v456_v22 }
 0x5b1   :  { %1343 = vmatmul.mubr.msk.bf16.vlgmr.msra.gmra.mrb[8].mxu0 %vm265_vm2, %v441_v23 }
 0x673   :  { %v1704_v25 = vpop.f32.mrb[4].mxu0 }
 0x674   :  { %v1706_v26 = vpop.f32.mrb[5].mxu0 }
 0x675   :  { %v1708_v29 = vpop.f32.mrb[6].mxu0 }
 0x676   :  { %v435_v30 = vpack.c.bf16 %v1708_v29, %v1704_v25  ;;  %v1712_v32 = vpop.f32.mrb[7].mxu0 }
 0x677   :  { %v434_v33 = vpack.c.bf16 %v1712_v32, %v1706_v26 }
 0x684   :  { %v1344_v34 = vpop.f32.mrb[8].mxu0 }
 0x685   :  { %v492_v35 = vpop.f32.mrb[9].mxu0  ;;  %v501_v39 = vadd.f32 %v1344_v34, %v1675_v31 }
 0x686   :  { %v493_v36 = vadd.f32 %v492_v35, %v1659_v24  ;;  %v1345_v37 = vpop.f32.mrb[10].mxu0 }
 0x687   :  { %v495_v38 = vpop.f32.mrb[11].mxu0  ;;  %v504_v43 = vadd.f32 %v1345_v37, %v1664_v27  ;;  %v513_v44 = vsel %vm121_vm1, %v501_v39, -inf  ;;  %v1237_v37 = vld [vmem:[%s1851_s7 + $0x21] ss:$0 sm:$0xff] }
 0x688   :  { %v496_v40 = vadd.f32 %v495_v38, %v1669_v28  ;;  %v507_v41 = vsel %vm121_vm1, %v493_v36, -inf }
 0x689   :  { %508 = vmax.xlane.f32.xlu0 %v507_v41  ;;  %v516_v45 = vsel %vm121_vm1, %v504_v43, -inf }
 0x68a   :  { %v510_v42 = vsel %vm121_vm1, %v496_v40, -inf }
 0x68b   :  { %511 = vmax.xlane.f32.xlu1 %v510_v42 }
 0x68d   :  { %514 = vmax.xlane.f32.xlu0 %v513_v44 }
 0x691   :  { %517 = vmax.xlane.f32.xlu0 %v516_v45 }
 0x716   :  { %v509_v24 = vpop.xlane.xlu0 %508 }
 0x717   :  { %v519_v46 = vsub.f32 %v493_v36, %v509_v24 }
 0x718   :  { %v512_v47 = vpop.xlane.xlu1 %511 }
 0x719   :  { %v523_v28 = vmul.f32 1.442695, %v519_v46  ;;  %v520_v49 = vsub.f32 %v496_v40, %v512_v47 }
 0x71a   :  { %v515_v31 = vpop.xlane.xlu0 %514 }
 0x71b   :  { %v521_v48 = vsub.f32 %v501_v39, %v515_v31  ;;  %v525_v53 = vmul.f32 1.442695, %v520_v49 }
 0x71d   :  { %v527_v50 = vmul.f32 1.442695, %v521_v48 }
 0x71e   :  { %v518_v51 = vpop.xlane.xlu0 %517 }
 0x71f   :  { %1457 = vpow2.f32 %v527_v50  ;;  %v522_v52 = vsub.f32 %v504_v43, %v518_v51 }
 0x720   :  { %1459 = vpow2.f32 %v523_v28 }
 0x721   :  { %v529_v27 = vmul.f32 1.442695, %v522_v52 }
 0x723   :  { %1461 = vpow2.f32 %v529_v27 }
 0x724   :  { %1463 = vpow2.f32 %v525_v53 }
 0x729   :  { %v1458_v54 = vpop.eup %1457 }
 0x72a   :  { %v537_v55 = vsel %vm121_vm1, %v1458_v54, 0.0  ;;  %v1460_v56 = vpop.eup %1459 }
 0x72b   :  { %538 = vadd.xlane.f32.xlu0 %v537_v55  ;;  %v531_v58 = vsel %vm121_vm1, %v1460_v56, 0.0 }
 0x72d   :  { %v1462_v57 = vpop.eup %1461 }
 0x72e   :  { %v540_v59 = vsel %vm121_vm1, %v1462_v57, 0.0  ;;  %v1464_v60 = vpop.eup %1463 }
 0x72f   :  { %532 = vadd.xlane.f32.xlu0 %v531_v58  ;;  %541 = vadd.xlane.f32.xlu1 %v540_v59  ;;  %v534_v61 = vsel %vm121_vm1, %v1464_v60, 0.0  ;;  %v1425_v59 = vld [vmem:[%s1848_s4] sm:$0xff]  }
 0x730   :  { %1366 = vmatprep.subr.bf16.mxu0 %v1425_v59 }
 0x731   :  { %1367 = vmatpush3.bf16.msra.mxu0 %v1425_v59 }
 0x733   :  { %535 = vadd.xlane.f32.xlu1 %v534_v61 }
 0x744   :  { %555 = vrot.lane.b32.xlu1 %v1642_v15, %s1525_s20 }
 0x745   :  { %553 = vrot.lane.b32.xlu0 %v1644_v17, %s1525_s20 }
 0x7b8   :  { %v539_v62 = vpop.xlane.xlu0 %538 }
 0x7bc   :  { %v542_v63 = vpop.xlane.xlu1 %541  ;;  %v533_v0 = vpop.xlane.xlu0 %532 }
 0x7bd   :  { %1465 = vrcp.f32 %v542_v63 }
 0x7be   :  { %1467 = vrcp.f32 %v533_v0 }
 0x7bf   :  { %1469 = vrcp.f32 %v539_v62 }
 0x7c0   :  { %v536_v1 = vpop.xlane.xlu1 %535  ;;  %v554_v2 = vpop.permute.xlu0 %553 }
 0x7c1   :  { %1471 = vrcp.f32 %v536_v1  ;;  %1346 = vmatprep.subr.bf16.mxu1 %v554_v2 }
 0x7c2   :  { %1347 = vmatpush3.bf16.msra.mxu1 %v554_v2 }
 0x7c4   :  { %v556_v4 = vpop.permute.xlu1 %555 }
 0x7c5   :  { %1348 = vmatprep.subr.bf16.mxu1 %v556_v4 }
 0x7c6   :  { %1349 = vmatpush3.bf16.msra.mxu1 %v556_v4 }
 0x7c7   :  { %1354 = vmatprep.subr.bf16.mxu1 %v1423_v3  ;;  %v1466_v15 = vpop.eup %1465 }
 0x7c8   :  { %v1468_v17 = vpop.eup %1467  ;;  %v550_v7 = vmul.f32 %v1466_v15, %v1462_v57 }
 0x7c9   :  { %v1470_v5 = vpop.eup %1469  ;;  %v547_v8 = vmul.f32 %v1468_v17, %v1460_v56 }
 0x7ca   :  { %v549_v10 = vmul.f32 %v1470_v5, %v1458_v54 }
 0x7cb   :  { %v1472_v6 = vpop.eup %1471 }
 0x7cc   :  { %v548_v9 = vmul.f32 %v1472_v6, %v1464_v60  ;;  %v552_v12 = vpack.c.bf16 %v550_v7, %v549_v10  ;;  %v1426_v60 = vld [vmem:[%s1848_s4 + $0x8] sm:$0xff]  }
 0x7cd   :  { %1368 = vmatprep.subr.bf16.mxu0 %v1426_v60 }
 0x7ce   :  { %v551_v11 = vpack.c.bf16 %v548_v9, %v547_v8  ;;  %1369 = vmatpush3.bf16.msra.mxu0 %v1426_v60 }
 0x7d0   :  { %1350 = vmatprep.mubr.msk.bf16.mxu1 %vm121_vm1, %v551_v11 }
 0x7d1   :  { %1351 = vmatmul.mubr.msk.bf16.vlgmr.msra.gmra.mrb[8].mxu1 %vm121_vm1, %v552_v12 }
 0x7d2   :  { %1355 = vmatpush3.bf16.msra.mxu1 %v1423_v3 }
 0x7d3   :  { %1360 = vmatprep.subr.bf16.mxu1 %v1424_v14 }
 0x8a4   :  { %v1352_v19 = vpop.f32.mrb[8].mxu1 }
 0x8a5   :  { %v599_v20 = vpop.f32.mrb[9].mxu1 }
 0x8a6   :  { %v1353_v22 = vpop.f32.mrb[10].mxu1 }
 0x8a7   :  { %v615_v23 = vpack.c.bf16 %v1353_v22, %v1352_v19  ;;  %v602_v34 = vpop.f32.mrb[11].mxu1 }
 0x8a8   :  { %v614_v35 = vpack.c.bf16 %v602_v34, %v599_v20  ;;  %v1428_v34 = vld [vmem:[%s1849_s5 + $0x8] sm:$0xff]  }
 0x8aa   :  { %1356 = vmatprep.mubr.msk.bf16.mxu1 %vm265_vm2, %v614_v35  ;;  %v1429_v35 = vld [vmem:[%s1849_s5 + $0x10] sm:$0xff]  }
 0x8ab   :  { %1357 = vmatmul.mubr.msk.bf16.vlgmr.msra.gmra.mrb[12].mxu1 %vm265_vm2, %v615_v23  ;;  %v1427_v23 = vld [vmem:[%s1849_s5] sm:$0xff]  }
 0x8ac   :  { %1361 = vmatpush3.bf16.msra.mxu1 %v1424_v14  ;;  %1362 = vmatprep.mubr.msk.bf16.mxu1 %vm265_vm2, %v434_v33 }
 0x8ad   :  { %1374 = vmatprep.subr.bf16.mxu0 %v1427_v23 }
 0x8b7   :  { %1363 = vmatmul.mubr.msk.bf16.vlgmr.msra.gmra.mrb[12].mxu1 %vm265_vm2, %v435_v30 }
 0x98a   :  { %v1364_v36 = vpop.f32.mrb[12].mxu1 }
 0x98b   :  { %v726_v38 = vpop.f32.mrb[13].mxu1  ;;  %v743_v26 = vadd.f32 %v1364_v36, %v1604_v13  ;;  %v1430_v36 = vld [vmem:[%s1849_s5 + $0x18] sm:$0xff]  }
 0x98c   :  { %v741_v39 = vadd.f32 %v726_v38, %v1609_v16  ;;  %v1365_v40 = vpop.f32.mrb[14].mxu1 }
 0x98d   :  { %v744_v41 = vadd.f32 %v1365_v40, %v1611_v18  ;;  %v729_v42 = vpop.f32.mrb[15].mxu1  ;;  %v1763_v43 = vadd.f32 %v1237_v37, %v743_v26 }
 0x98e   :  { %v1754_v32 = vadd.f32 %v1237_v37, %v741_v39  ;;  %v742_v25 = vadd.f32 %v729_v42, %v1615_v21 }
 0x98f   :  { %v1757_v29 = vadd.f32 %v1237_v37, %v744_v41  ;;  %v760_v18 = vsel %vm121_vm1, %v1763_v43, 0.0 }
 0x990   :  { %v1759_v30 = vadd.f32 %v1237_v37, %v742_v25  ;;  %v754_v33 = vsel %vm121_vm1, %v1754_v32, 0.0  ;;  %v1238_v37 = vld [vmem:[%s1851_s7 + $0x22] ss:$0 sm:$0xff] }
 0x991   :  { %755 = vadd.xlane.f32.xlu1 %v754_v33  ;;  %v763_v13 = vsel %vm121_vm1, %v1757_v29, 0.0 }
 0x992   :  { %v757_v16 = vsel %vm121_vm1, %v1759_v30, 0.0 }
 0x993   :  { %758 = vadd.xlane.f32.xlu0 %v757_v16 }
 0x995   :  { %764 = vadd.xlane.f32.xlu1 %v763_v13 }
 0x997   :  { %761 = vadd.xlane.f32.xlu0 %v760_v18 }
 0xa1e   :  { %v756_v21 = vpop.xlane.xlu1 %755 }
 0xa1f   :  { %v766_v44 = vmul.f32 0.03125, %v756_v21 }
 0xa20   :  { %v759_v45 = vpop.xlane.xlu0 %758 }
 0xa21   :  { %v770_v24 = vsub.f32 %v1754_v32, %v766_v44  ;;  %v767_v46 = vmul.f32 0.03125, %v759_v45 }
 0xa22   :  { %v765_v47 = vpop.xlane.xlu1 %764 }
 0xa23   :  { %v771_v31 = vsub.f32 %v1759_v30, %v767_v46  ;;  %v769_v48 = vmul.f32 0.03125, %v765_v47  ;;  %v774_v28 = vmul.f32 %v770_v24, %v770_v24 }
 0xa24   :  { %v762_v49 = vpop.xlane.xlu0 %761 }
 0xa25   :  { %v773_v50 = vsub.f32 %v1757_v29, %v769_v48  ;;  %v768_v51 = vmul.f32 0.03125, %v762_v49  ;;  %v778_v52 = vsel %vm121_vm1, %v774_v28, 0.0  ;;  %v775_v53 = vmul.f32 %v771_v31, %v771_v31 }
 0xa26   :  { %779 = vadd.xlane.f32.xlu0 %v778_v52 }
 0xa27   :  { %v772_v27 = vsub.f32 %v1763_v43, %v768_v51  ;;  %v781_v54 = vsel %vm121_vm1, %v775_v53, 0.0  ;;  %v777_v55 = vmul.f32 %v773_v50, %v773_v50 }
 0xa28   :  { %782 = vadd.xlane.f32.xlu1 %v781_v54 }
 0xa29   :  { %v776_v56 = vmul.f32 %v772_v27, %v772_v27  ;;  %v787_v57 = vsel %vm121_vm1, %v777_v55, 0.0 }
 0xa2b   :  { %v784_v58 = vsel %vm121_vm1, %v776_v56, 0.0 }
 0xa2c   :  { %788 = vadd.xlane.f32.xlu1 %v787_v57  ;;  %785 = vadd.xlane.f32.xlu0 %v784_v58 }
 0xab3   :  { %v780_v61 = vpop.xlane.xlu0 %779 }
 0xab4   :  { %v790_v62 = vmul.f32 0.03125, %v780_v61 }
 0xab5   :  { %v783_v63 = vpop.xlane.xlu1 %782 }
 0xab6   :  { %v794_v0 = vadd.f32 1e-06, %v790_v62  ;;  %v791_v1 = vmul.f32 0.03125, %v783_v63 }
 0xab8   :  { %1473 = vrsqrt.f32 %v794_v0  ;;  %v795_v2 = vadd.f32 1e-06, %v791_v1 }
 0xab9   :  { %v789_v3 = vpop.xlane.xlu1 %788  ;;  %v786_v4 = vpop.xlane.xlu0 %785 }
 0xaba   :  { %1475 = vrsqrt.f32 %v795_v2  ;;  %v793_v15 = vmul.f32 0.03125, %v789_v3  ;;  %v792_v17 = vmul.f32 0.03125, %v786_v4 }
 0xabc   :  { %v797_v5 = vadd.f32 1e-06, %v793_v15  ;;  %v796_v6 = vadd.f32 1e-06, %v792_v17 }
 0xabe   :  { %1477 = vrsqrt.f32 %v797_v5 }
 0xabf   :  { %1479 = vrsqrt.f32 %v796_v6 }
 0xac2   :  { %v1474_v7 = vpop.eup %1473 }
 0xac3   :  { %v802_v9 = vmul.f32 %v1474_v7, %v770_v24 }
 0xac4   :  { %v1476_v8 = vpop.eup %1475 }
 0xac5   :  { %v803_v10 = vmul.f32 %v1476_v8, %v771_v31  ;;  %v1243_v8 = vld [vmem:[%s1851_s7 + $0x23] ss:$0 sm:$0xff] }
 0xac7   :  { %v806_v11 = vpack.c.bf16 %v803_v10, %v802_v9 }
 0xac8   :  { %v1478_v12 = vpop.eup %1477 }
 0xac9   :  { %v1480_v14 = vpop.eup %1479  ;;  %v805_v19 = vmul.f32 %v1478_v12, %v773_v50  ;;  %1370 = vmatprep.mubr.msk.bf16.mxu0 %vm121_vm1, %v806_v11 }
 0xaca   :  { %v804_v20 = vmul.f32 %v1480_v14, %v772_v27 }
 0xacc   :  { %v807_v22 = vpack.c.bf16 %v805_v19, %v804_v20 }
 0xace   :  { %1371 = vmatmul.mubr.msk.bf16.vlgmr.msra.gmra.mrb[12].mxu0 %vm121_vm1, %v807_v22 }
 0xacf   :  { %1375 = vmatpush3.bf16.msra.mxu0 %v1427_v23 }
 0xad0   :  { %1376 = vmatprep.subr.bf16.mxu0 %v1428_v34 }
 0xad3   :  { %1377 = vmatpush3.bf16.msra.mxu0 %v1428_v34 }
 0xad4   :  { %1378 = vmatprep.subr.bf16.mxu0 %v1429_v35 }
 0xad7   :  { %1379 = vmatpush3.bf16.msra.mxu0 %v1429_v35 }
 0xad8   :  { %1380 = vmatprep.subr.bf16.mxu0 %v1430_v36 }
 0xadb   :  { %1381 = vmatpush3.bf16.msra.mxu0 %v1430_v36 }
 0xba1   :  { %v1372_v38 = vpop.f32.mrb[12].mxu0 }
 0xba2   :  { %v878_v39 = vadd.f32 %v1372_v38, %v1238_v37  ;;  %v869_v40 = vpop.f32.mrb[13].mxu0 }
 0xba3   :  { %v870_v41 = vadd.f32 %v1238_v37, %v869_v40  ;;  %v1373_v42 = vpop.f32.mrb[14].mxu0 }
 0xba4   :  { %v886_v26 = vmul.f32 %v878_v39, %v878_v39  ;;  %v881_v25 = vadd.f32 %v1373_v42, %v1238_v37  ;;  %v872_v33 = vpop.f32.mrb[15].mxu0 }
 0xba5   :  { %v884_v16 = vmul.f32 %v870_v41, %v870_v41  ;;  %v873_v13 = vadd.f32 %v1238_v37, %v872_v33 }
 0xba6   :  { %v890_v18 = vmul.f32 %v886_v26, %v878_v39  ;;  %v887_v21 = vmul.f32 %v881_v25, %v881_v25 }
 0xba7   :  { %v888_v44 = vmul.f32 %v884_v16, %v870_v41  ;;  %v885_v45 = vmul.f32 %v873_v13, %v873_v13 }
 0xba8   :  { %v894_v24 = vmul.f32 0.044715, %v890_v18  ;;  %v891_v46 = vmul.f32 %v887_v21, %v881_v25 }
 0xba9   :  { %v892_v47 = vmul.f32 0.044715, %v888_v44  ;;  %v889_v31 = vmul.f32 %v885_v45, %v873_v13 }
 0xbaa   :  { %v898_v48 = vadd.f32 %v894_v24, %v878_v39  ;;  %v895_v28 = vmul.f32 0.044715, %v891_v46 }
 0xbab   :  { %v896_v49 = vadd.f32 %v892_v47, %v870_v41  ;;  %v893_v50 = vmul.f32 0.044715, %v889_v31 }
 0xbac   :  { %v902_v51 = vmul.f32 0.7978846, %v898_v48  ;;  %v899_v52 = vadd.f32 %v895_v28, %v881_v25  ;;  %v1431_v28 = vld [vmem:[%s1850_s6] sm:$0xff]  }
 0xbad   :  { %v900_v53 = vmul.f32 0.7978846, %v896_v49  ;;  %v897_v27 = vadd.f32 %v893_v50, %v873_v13  ;;  %1386 = vmatprep.subr.bf16.mxu1 %v1431_v28  ;;  %v1432_v49 = vld [vmem:[%s1850_s6 + $0x8] sm:$0xff]  }
 0xbae   :  { %1481 = vtanh.f32 %v902_v51  ;;  %v903_v54 = vmul.f32 0.7978846, %v899_v52  ;;  %1387 = vmatpush3.bf16.msra.mxu1 %v1431_v28 }
 0xbaf   :  { %1483 = vtanh.f32 %v900_v53  ;;  %v901_v55 = vmul.f32 0.7978846, %v897_v27  ;;  %1388 = vmatprep.subr.bf16.mxu1 %v1432_v49 }
 0xbb0   :  { %1485 = vtanh.f32 %v903_v54 }
 0xbb1   :  { %1487 = vtanh.f32 %v901_v55 }
 0xbb2   :  { %1389 = vmatpush3.bf16.msra.mxu1 %v1432_v49 }
 0xbb8   :  { %v1482_v56 = vpop.eup %1481 }
 0xbb9   :  { %v1484_v57 = vpop.eup %1483  ;;  %v910_v58 = vadd.f32 1.0, %v1482_v56 }
 0xbba   :  { %v1486_v59 = vpop.eup %1485  ;;  %v908_v60 = vadd.f32 1.0, %v1484_v57 }
 0xbbb   :  { %v1488_v61 = vpop.eup %1487  ;;  %v914_v62 = vmul.f32 0.5, %v910_v58  ;;  %v911_v63 = vadd.f32 1.0, %v1486_v59 }
 0xbbc   :  { %v912_v0 = vmul.f32 0.5, %v908_v60  ;;  %v909_v1 = vadd.f32 1.0, %v1488_v61 }
 0xbbd   :  { %v915_v2 = vmul.f32 0.5, %v911_v63  ;;  %v918_v4 = vmul.f32 %v914_v62, %v878_v39 }
 0xbbe   :  { %v913_v3 = vmul.f32 0.5, %v909_v1  ;;  %v916_v17 = vmul.f32 %v912_v0, %v870_v41 }
 0xbbf   :  { %v919_v15 = vmul.f32 %v915_v2, %v881_v25 }
 0xbc0   :  { %v917_v5 = vmul.f32 %v913_v3, %v873_v13 }
 0xbc1   :  { %v921_v6 = vpack.c.bf16 %v919_v15, %v918_v4 }
 0xbc2   :  { %v920_v7 = vpack.c.bf16 %v917_v5, %v916_v17  ;;  %v1526_v5 = vmov 0.0  }
 0xbc3   :  { %1394 = vmatprep.subr.bf16.mxu1 %v1526_v5 }
 0xbc4   :  { %1382 = vmatprep.mubr.msk.bf16.mxu0 %vm959_vm3, %v920_v7 }
 0xbc5   :  { %1383 = vmatmul.mubr.msk.bf16.vlgmr.msra.gmra.mrb[16].mxu0 %vm959_vm3, %v921_v6 }
 0xc98   :  { %v1384_v9 = vpop.f32.mrb[16].mxu0 }
 0xc99   :  { %v1000_v10 = vpop.f32.mrb[17].mxu0  ;;  %v1009_v11 = vadd.f32 %v1384_v9, %v1243_v8 }
 0xc9a   :  { %v1001_v12 = vadd.f32 %v1243_v8, %v1000_v10  ;;  %v1385_v14 = vpop.f32.mrb[18].mxu0 }
 0xc9b   :  { %v1003_v19 = vpop.f32.mrb[19].mxu0  ;;  %v1012_v20 = vadd.f32 %v1385_v14, %v1243_v8  ;;  %v1017_v36 = vadd.f32 %v1009_v11, %v1763_v43 }
 0xc9c   :  { %v1004_v22 = vadd.f32 %v1243_v8, %v1003_v19  ;;  %v1015_v23 = vadd.f32 %v1001_v12, %v1754_v32  ;;  %v1144_v12 = vld [vmem:[%s1851_s7 + $0x25] sm:$0x3]  ;;  %v1254_v19 = vld [vmem:[%s1851_s7 + $0x24] ss:$0 sm:$0xff] }
 0xc9d   :  { %v1018_v38 = vadd.f32 %v1012_v20, %v1757_v29  ;;  %v1025_v39 = vsel %vm121_vm1, %v1017_v36, 0.0  ;;  %v1145_v14 = vpack.c.bf16 %v1144_v12, %v1144_v12 }
 0xc9e   :  { %v1019_v34 = vsel %vm121_vm1, %v1015_v23, 0.0  ;;  %v1016_v35 = vadd.f32 %v1004_v22, %v1759_v30 }
 0xc9f   :  { %1020 = vadd.xlane.f32.xlu0 %v1019_v34  ;;  %v1028_v40 = vsel %vm121_vm1, %v1018_v38, 0.0 }
 0xca0   :  { %v1022_v37 = vsel %vm121_vm1, %v1016_v35, 0.0 }
 0xca1   :  { %1023 = vadd.xlane.f32.xlu1 %v1022_v37 }
 0xca3   :  { %1026 = vadd.xlane.f32.xlu0 %v1025_v39 }
 0xca5   :  { %1029 = vadd.xlane.f32.xlu1 %v1028_v40 }
 0xd2c   :  { %v1021_v41 = vpop.xlane.xlu0 %1020 }
 0xd2d   :  { %v1031_v32 = vmul.f32 0.03125, %v1021_v41 }
 0xd2e   :  { %v1024_v42 = vpop.xlane.xlu1 %1023 }
 0xd2f   :  { %v1035_v26 = vsub.f32 %v1015_v23, %v1031_v32  ;;  %v1032_v25 = vmul.f32 0.03125, %v1024_v42 }
 0xd30   :  { %v1027_v30 = vpop.xlane.xlu0 %1026 }
 0xd31   :  { %v1036_v33 = vsub.f32 %v1016_v35, %v1032_v25  ;;  %v1033_v43 = vmul.f32 0.03125, %v1027_v30  ;;  %v1039_v16 = vmul.f32 %v1035_v26, %v1035_v26 }
 0xd32   :  { %v1030_v13 = vpop.xlane.xlu1 %1029 }
 0xd33   :  { %v1037_v18 = vsub.f32 %v1017_v36, %v1033_v43  ;;  %v1034_v21 = vmul.f32 0.03125, %v1030_v13  ;;  %v1043_v29 = vsel %vm121_vm1, %v1039_v16, 0.0  ;;  %v1040_v44 = vmul.f32 %v1036_v33, %v1036_v33 }
 0xd34   :  { %1044 = vadd.xlane.f32.xlu0 %v1043_v29 }
 0xd35   :  { %v1038_v45 = vsub.f32 %v1018_v38, %v1034_v21  ;;  %v1046_v24 = vsel %vm121_vm1, %v1040_v44, 0.0  ;;  %v1041_v46 = vmul.f32 %v1037_v18, %v1037_v18 }
 0xd36   :  { %1047 = vadd.xlane.f32.xlu1 %v1046_v24 }
 0xd37   :  { %v1049_v47 = vsel %vm121_vm1, %v1041_v46, 0.0  ;;  %v1042_v31 = vmul.f32 %v1038_v45, %v1038_v45 }
 0xd38   :  { %1050 = vadd.xlane.f32.xlu0 %v1049_v47 }
 0xd39   :  { %v1052_v48 = vsel %vm121_vm1, %v1042_v31, 0.0 }
 0xd3a   :  { %1053 = vadd.xlane.f32.xlu1 %v1052_v48 }
 0xdc1   :  { %v1045_v50 = vpop.xlane.xlu0 %1044 }
 0xdc2   :  { %v1055_v51 = vmul.f32 0.03125, %v1045_v50 }
 0xdc3   :  { %v1048_v52 = vpop.xlane.xlu1 %1047 }
 0xdc4   :  { %v1059_v53 = vadd.f32 1e-06, %v1055_v51  ;;  %v1056_v27 = vmul.f32 0.03125, %v1048_v52 }
 0xdc5   :  { %v1051_v54 = vpop.xlane.xlu0 %1050 }
 0xdc6   :  { %1489 = vrsqrt.f32 %v1059_v53  ;;  %v1060_v55 = vadd.f32 1e-06, %v1056_v27  ;;  %v1057_v56 = vmul.f32 0.03125, %v1051_v54 }
 0xdc7   :  { %v1054_v57 = vpop.xlane.xlu1 %1053 }
 0xdc8   :  { %1491 = vrsqrt.f32 %v1060_v55  ;;  %v1061_v58 = vadd.f32 1e-06, %v1057_v56  ;;  %v1058_v59 = vmul.f32 0.03125, %v1054_v57 }
 0xdca   :  { %1493 = vrsqrt.f32 %v1061_v58  ;;  %v1062_v60 = vadd.f32 1e-06, %v1058_v59 }
 0xdcc   :  { %1495 = vrsqrt.f32 %v1062_v60 }
 0xdd0   :  { %v1490_v61 = vpop.eup %1489 }
 0xdd1   :  { %v1067_v63 = vmul.f32 %v1490_v61, %v1035_v26 }
 0xdd2   :  { %v1492_v62 = vpop.eup %1491 }
 0xdd3   :  { %v1068_v0 = vmul.f32 %v1492_v62, %v1036_v33 }
 0xdd4   :  { %v1494_v1 = vpop.eup %1493 }
 0xdd5   :  { %v1071_v2 = vpack.c.bf16 %v1068_v0, %v1067_v63  ;;  %v1069_v4 = vmul.f32 %v1494_v1, %v1037_v18 }
 0xdd6   :  { %v1496_v3 = vpop.eup %1495 }
 0xdd7   :  { %v1070_v15 = vmul.f32 %v1496_v3, %v1038_v45  ;;  %1390 = vmatprep.mubr.msk.bf16.mxu1 %vm121_vm1, %v1071_v2 }
 0xdd9   :  { %v1072_v17 = vpack.c.bf16 %v1070_v15, %v1069_v4 }
 0xddb   :  { %1391 = vmatmul.mubr.msk.bf16.vlgmr.msra.gmra.mrb[16].mxu1 %vm121_vm1, %v1072_v17 }
 0xddc   :  { %1398 = vmatprep.mubr.msk.bf16.mxu1 %vm1527_vm4, %v1526_v5 }
 0xeae   :  { %v1392_v6 = vpop.f32.mrb[16].mxu1 }
 0xeaf   :  { %v1129_v7 = vpop.f32.mrb[17].mxu1 }
 0xeb0   :  { %v1393_v8 = vpop.f32.mrb[18].mxu1 }
 0xeb1   :  { %v1147_v9 = vpack.c.bf16 %v1393_v8, %v1392_v6  ;;  %v1132_v10 = vpop.f32.mrb[19].mxu1 }
 0xeb2   :  { %v1146_v11 = vpack.c.bf16 %v1132_v10, %v1129_v7 }
 0xeb4   :  { %1395 = vmatpush3.bf16.msra.mxu1 %v1146_v11 }
 0xeb5   :  { %1396 = vmatprep.subr.bf16.mxu1 %v1526_v5 }
 0xeb8   :  { %1397 = vmatpush3.bf16.msra.mxu1 %v1147_v9 }
 0xebb   :  { %1399 = vmatmul.mubr.msk.bf16.vlgmr.msra.gmra.mrb[20].mxu1 %vm121_vm1, %v1145_v14 }
 0xf8e   :  { %v1190_v20 = vpop.f32.mrb[20].mxu1 }
 0xf8f   :  { %v1191_v22 = vadd.f32 %v1254_v19, %v1190_v20  ;;  %v1400_v23 = vpop.f32.mrb[21].mxu1 }
 0xf90   :  { %v1193_v34 = vpop.f32.mrb[22].mxu1 }
 0xf91   :  { %1196 = vst [vmem:[#allocation2] sm:$0x3] %v1191_v22  ;;  %v1401_v35 = vpop.f32.mrb[23].mxu1 }
 0xf92   :  { %1508 = shalt.err (!%p1505_p4)
}
 0xf93   :  { %s1509_s7 = scalar_lea.hbm %s1852_s8, 32 }
 0xf94   :  { %p1510_p5 = scmp.ne.s32.totalorder %s1852_s8, %s1509_s7  ;;  %p1513_p6 = scmp.lt.u32.totalorder %s1509_s7, %s1852_s8 }
 0xf96   :  { %p1515_p7 = pnand %p1513_p6, %p1510_p5 }
 0xf98   :  { %1518 = shalt.err (!%p1515_p7)
}
 0xf99   :  { %1206 = dma.vmem_to_hbm [thread:$0]  %s1204_s22, 32, %s1852_s8, [#allocation3]  }
 0xf9a   :  { %1519 = dma.done.wait [#allocation3], 32  }
 0xf9b   :  { %1520 = vsyncadd [#allocation3], 4294967264 }
 0xf9c   :  { %1210 = vsyncpa [#allocation3], 1 }

</bundles_post_ra>
